<compile_context>
chip_gen: v5e
topology: v5e:2x2
jax: 0.10.0
libtpu: 0.0.40
codegen_flags: <defaults>
</compile_context>

<pallas_src>
import functools

import jax
import jax.numpy as jnp
from jax.experimental import pallas as pl
from jax.experimental.pallas import tpu as pltpu


def _round_up(x, m):
    return (x + m - 1) // m * m


def _b2lock2_kernel(patches_ref, w_ref, gamma_ref, beta_ref, out_ref,
                    sum_ref, sq_ref, scale_ref, shift_ref, *cache_refs,
                    m_real, eps, use_cache):
    """patches_ref: (TM, Kp) bf16   w_ref: (Kp, Cp) bf16
       gamma/beta:  (1, Cp) f32     out_ref: (TM, Cp) bf16
       sum/sq/scale/shift: (1, Cp) f32 VMEM scratch (persist across the grid)
       cache_refs[0] (optional): (num_m, TM, Cp) bf16 conv-tile cache."""
    phase = pl.program_id(0)
    tile = pl.program_id(1)

    @pl.when((phase == 0) & (tile == 0))
    def _init():
        sum_ref[...] = jnp.zeros_like(sum_ref)
        sq_ref[...] = jnp.zeros_like(sq_ref)

    @pl.when(phase == 0)
    def _phase0():
        # Conv tile on the MXU: bf16 operands, f32 accumulation.
        conv = jnp.dot(patches_ref[...], w_ref[...],
                       preferred_element_type=jnp.float32)          # (TM, Cp) f32
        # Per-channel partial sums over the M (sublane) axis -> XLU, off the MXU path.
        sum_ref[...] += jnp.sum(conv, axis=0, keepdims=True)
        sq_ref[...] += jnp.sum(conv * conv, axis=0, keepdims=True)
        if use_cache:
            cache_refs[0][tile] = conv.astype(cache_refs[0].dtype)

    # Global batch statistics -> affine scale/shift, computed exactly once.
    @pl.when((phase == 1) & (tile == 0))
    def _stats():
        inv_m = 1.0 / m_real
        mean = sum_ref[...] * inv_m                                  # (1, Cp)
        var = jnp.maximum(sq_ref[...] * inv_m - mean * mean, 0.0)
        s = gamma_ref[...] * jax.lax.rsqrt(var + eps)
        scale_ref[...] = s
        shift_ref[...] = beta_ref[...] - mean * s

    @pl.when(phase == 1)
    def _normalize():
        if use_cache:
            conv = cache_refs[0][tile].astype(jnp.float32)           # cached conv tile
        else:
            conv = jnp.dot(patches_ref[...], w_ref[...],             # recompute (cheap bf16)
                           preferred_element_type=jnp.float32)
        y = jnp.maximum(conv * scale_ref[...] + shift_ref[...], 0.0)
        out_ref[...] = y.astype(out_ref.dtype)                       # lane-dense bf16 store


def b2lock2_forward(x, weight, gamma, beta, *, stride=2, pad=1, eps=1e-5,
                    out_format="NCHW"):
    """x: (N, Cin, H, W) f32; weight: (Cout, Cin, kh, kw); gamma/beta: (Cout,)."""
    N, Cin, H, W = x.shape
    Cout, _, kh, kw = weight.shape
    Ho = (H + 2 * pad - kh) // stride + 1
    Wo = (W + 2 * pad - kw) // stride + 1
    M = N * Ho * Wo
    K = Cin * kh * kw

    LANE = 128
    C_pad = _round_up(Cout, LANE)                  # lane-dense output / MXU width
    K_pad = _round_up(K, 16)                       # bf16 sublane-aligned contraction depth
    TM = 2048 if M >= 2048 else _round_up(M, 16)   # large row tile (sublane-aligned)
    M_pad = _round_up(M, TM)
    num_m = M_pad // TM

    # Conv-tile cache in persistent VMEM (skips the phase-1 recompute + second patch DMA)
    # when the whole bf16 conv result stays within a conservative cross-generation budget.
    cache_bytes = M_pad * C_pad * 2
    use_cache = cache_bytes <= (8 << 20)

    # ---- channels-last patch matrix, built directly in final (M, K) layout ----
    # rows ordered (n, ho, wo); K ordered (kh, kw, cin) to match the weight flattening.
    # TODO(synk): for larger Cin/K, build patches in-kernel from NHWC input blocks
    # (9-tap accumulation) to avoid the XLA-side im2col write + read.
    x_nhwc = jnp.transpose(x, (0, 2, 3, 1)).astype(jnp.float32)
    xp = jnp.pad(x_nhwc, ((0, 0), (pad, pad), (pad, pad), (0, 0)))
    cols = []
    for i in range(kh):
        for j in range(kw):
            cols.append(xp[:, i: i + stride * (Ho - 1) + 1: stride,
                           j: j + stride * (Wo - 1) + 1: stride, :])   # (N, Ho, Wo, Cin)
    patches = jnp.concatenate(cols, axis=-1).reshape(M, K)
    patches = jnp.pad(patches, ((0, M_pad - M), (0, K_pad - K))).astype(jnp.bfloat16)

    # weight (Cout, Cin, kh, kw) -> (kh, kw, Cin, Cout) -> (K, Cout), zero-padded.
    w_mat = jnp.transpose(weight.astype(jnp.float32), (2, 3, 1, 0)).reshape(K, Cout)
    w_mat = jnp.pad(w_mat, ((0, K_pad - K), (0, C_pad - Cout))).astype(jnp.bfloat16)

    gamma_p = jnp.pad(gamma.astype(jnp.float32), (0, C_pad - Cout)).reshape(1, C_pad)
    beta_p = jnp.pad(beta.astype(jnp.float32), (0, C_pad - Cout)).reshape(1, C_pad)

    kernel = functools.partial(_b2lock2_kernel, m_real=float(M), eps=float(eps),
                               use_cache=use_cache)

    # Phase 1 only re-streams patch tiles when not caching the conv result.
    if use_cache:
        patch_map = lambda p, m: ((1 - p) * m, 0)
    else:
        patch_map = lambda p, m: (m, 0)

    scratch_shapes = [pltpu.VMEM((1, C_pad), jnp.float32),     # per-channel sum
                      pltpu.VMEM((1, C_pad), jnp.float32),     # per-channel sum of squares
                      pltpu.VMEM((1, C_pad), jnp.float32),     # fused BN scale
                      pltpu.VMEM((1, C_pad), jnp.float32)]     # fused BN shift
    if use_cache:
        scratch_shapes.append(pltpu.VMEM((num_m, TM, C_pad), jnp.bfloat16))

    n_dots = 1 if use_cache else 2
    cost = pl.CostEstimate(
        flops=int(2 * n_dots * M_pad * K_pad * C_pad + 8 * M_pad * C_pad),
        transcendentals=int(C_pad),
        bytes_accessed=int(n_dots * M_pad * K_pad * 2      # patch reads (bf16)
                           + K_pad * C_pad * 2             # resident weights
                           + M_pad * C_pad * 2),           # bf16 output write
    )

    out = pl.pallas_call(
        kernel,
        out_shape=jax.ShapeDtypeStruct((M_pad, C_pad), jnp.bfloat16),
        grid_spec=pltpu.PrefetchScalarGridSpec(
            num_scalar_prefetch=0,
            grid=(2, num_m),                                        # (phase, M tiles)
            in_specs=[
                pl.BlockSpec((TM, K_pad), patch_map),               # streamed patch tiles
                pl.BlockSpec((K_pad, C_pad), lambda p, m: (0, 0)),  # weights resident
                pl.BlockSpec((1, C_pad), lambda p, m: (0, 0)),
                pl.BlockSpec((1, C_pad), lambda p, m: (0, 0)),
            ],
            # Phase 0 parks the (unwritten) output buffer on block 0; phase 1 writes
            # each tile exactly once, so every HBM writeback carries final data.
            # NOTE: relies on the strictly serial ("arbitrary","arbitrary") grid order.
            out_specs=pl.BlockSpec((TM, C_pad), lambda p, m: (p * m, 0)),
            scratch_shapes=scratch_shapes,
        ),
        compiler_params=pltpu.CompilerParams(
            dimension_semantics=("arbitrary", "arbitrary"),
            vmem_limit_bytes=32 * 1024 * 1024),
        cost_estimate=cost,
    )(patches, w_mat, gamma_p, beta_p)

    out = out[:M, :Cout].astype(jnp.float32).reshape(N, Ho, Wo, Cout)   # NHWC (native)
    if out_format == "NHWC":
        return out
    return jnp.transpose(out, (0, 3, 1, 2))            # NCHW to match the PyTorch module


def _reference(x, weight, gamma, beta, *, stride=2, pad=1, eps=1e-5):
    """Pure-JAX f32 reference of Conv2d(no bias) -> BatchNorm2d(batch stats) -> ReLU."""
    conv = jax.lax.conv_general_dilated(
        x, weight, window_strides=(stride, stride),
        padding=((pad, pad), (pad, pad)),
        dimension_numbers=("NCHW", "OIHW", "NCHW"),
        precision=jax.lax.Precision.HIGHEST)
    mean = conv.mean(axis=(0, 2, 3), keepdims=True)
    var = conv.var(axis=(0, 2, 3), keepdims=True)       # biased, as BN uses for normalize
    y = (conv - mean) * jax.lax.rsqrt(var + eps)
    y = y * gamma.reshape(1, -1, 1, 1) + beta.reshape(1, -1, 1, 1)
    return jnp.maximum(y, 0.0)


if __name__ == "__main__":
    key = jax.random.PRNGKey(0)
    k_x, k_w = jax.random.split(key)

    N, Cin, H, W = 2, 4, 16, 16
    Cout, ker = 8, 3

    x = jax.random.normal(k_x, (N, Cin, H, W), dtype=jnp.float32)
    # deterministic parameter init (shapes per B2lock2.__init__; no checkpoint load)
    weight = jax.random.normal(k_w, (Cout, Cin, ker, ker), dtype=jnp.float32) * 0.1
    gamma = jnp.ones((Cout,), dtype=jnp.float32)    # BatchNorm2d default weight
    beta = jnp.zeros((Cout,), dtype=jnp.float32)    # BatchNorm2d default bias

    out = b2lock2_forward(x, weight, gamma, beta, stride=2, pad=1)
    jax.block_until_ready(out)
    assert out.shape == (N, Cout, H // 2, W // 2), out.shape

    ref = _reference(x, weight, gamma, beta, stride=2, pad=1)
    max_err = float(jnp.max(jnp.abs(out - ref)))
    assert jnp.allclose(out, ref, atol=1e-1, rtol=5e-2), f"max_err={max_err}"

    print("KERNEL_OK")
</pallas_src>

<mosaic_0001>
module attributes {stable_mosaic.version = 11 : i64} {
  func.func @_b2lock2_kernel(%arg0: i32, %arg1: i32, %arg2: memref<128x48xbf16, #tpu.memory_space<vmem>>, %arg3: memref<48x128xbf16, #tpu.memory_space<vmem>>, %arg4: memref<1x128xf32, #tpu.memory_space<vmem>>, %arg5: memref<1x128xf32, #tpu.memory_space<vmem>>, %arg6: memref<128x128xbf16, #tpu.memory_space<vmem>>, %arg7: memref<1x128xf32, #tpu.memory_space<vmem>>, %arg8: memref<1x128xf32, #tpu.memory_space<vmem>>, %arg9: memref<1x128xf32, #tpu.memory_space<vmem>>, %arg10: memref<1x128xf32, #tpu.memory_space<vmem>>, %arg11: memref<1x128x128xbf16, #tpu.memory_space<vmem>>) attributes {dimension_semantics = [#tpu.dimension_semantics<arbitrary>, #tpu.dimension_semantics<arbitrary>], iteration_bounds = array<i64: 2, 1>, scalar_prefetch = 0 : i64, scratch_operands = 5 : i64, tpu.core_type = #tpu.core_type<tc>, window_params = [{transform_indices = @transform_0, window_bounds = array<i64: 128, 48>}, {pipeline_mode = #tpu.pipeline_mode<synchronous>, transform_indices = @transform_1, window_bounds = array<i64: 48, 128>}, {pipeline_mode = #tpu.pipeline_mode<synchronous>, transform_indices = @transform_2, window_bounds = array<i64: 1, 128>}, {pipeline_mode = #tpu.pipeline_mode<synchronous>, transform_indices = @transform_3, window_bounds = array<i64: 1, 128>}, {transform_indices = @transform_4, window_bounds = array<i64: 128, 128>}]} {
    %c0_i32 = arith.constant 0 : i32
    %0 = arith.cmpi eq, %arg0, %c0_i32 : i32
    %c0_i32_0 = arith.constant 0 : i32
    %1 = arith.cmpi eq, %arg1, %c0_i32_0 : i32
    %2 = arith.andi %0, %1 : i1
    %3 = arith.extui %2 : i1 to i32
    %c0_i32_1 = arith.constant 0 : i32
    %4 = arith.cmpi ne, %3, %c0_i32_1 : i32
    scf.if %4 {
      %cst = arith.constant 0.000000e+00 : f32
      %16 = vector.broadcast %cst : f32 to vector<1x128xf32>
      %c0 = arith.constant 0 : index
      %c0_8 = arith.constant 0 : index
      %17 = vector.load %arg7[%c0, %c0_8] : memref<1x128xf32, #tpu.memory_space<vmem>>, vector<1x128xf32>
      tpu.vector_store %arg7[%c0, %c0_8], %16 {strides = array<i32>} : memref<1x128xf32, #tpu.memory_space<vmem>>, vector<1x128xf32>,
      %cst_9 = arith.constant 0.000000e+00 : f32
      %18 = vector.broadcast %cst_9 : f32 to vector<1x128xf32>
      %c0_10 = arith.constant 0 : index
      %c0_11 = arith.constant 0 : index
      %19 = vector.load %arg8[%c0_10, %c0_11] : memref<1x128xf32, #tpu.memory_space<vmem>>, vector<1x128xf32>
      tpu.vector_store %arg8[%c0_10, %c0_11], %18 {strides = array<i32>} : memref<1x128xf32, #tpu.memory_space<vmem>>, vector<1x128xf32>,
    } else {
    }
    %c0_i32_2 = arith.constant 0 : i32
    %5 = arith.cmpi eq, %arg0, %c0_i32_2 : i32
    %6 = arith.extui %5 : i1 to i32
    %c0_i32_3 = arith.constant 0 : i32
    %7 = arith.cmpi ne, %6, %c0_i32_3 : i32
    scf.if %7 {
      %c0 = arith.constant 0 : index
      %c0_8 = arith.constant 0 : index
      %16 = vector.load %arg2[%c0, %c0_8] : memref<128x48xbf16, #tpu.memory_space<vmem>>, vector<128x48xbf16>
      %c0_9 = arith.constant 0 : index
      %c0_10 = arith.constant 0 : index
      %17 = vector.load %arg3[%c0_9, %c0_10] : memref<48x128xbf16, #tpu.memory_space<vmem>>, vector<48x128xbf16>
      %cst = arith.constant dense<0.000000e+00> : vector<128x128xf32>
      %18 = tpu.matmul %16, %17, %cst {dimension_numbers = #tpu.dot_dimension_numbers<[1], [0], [0], [1], [0, 0, 1, 1], [], []>} : vector<128x48xbf16>, vector<48x128xbf16>, vector<128x128xf32> -> vector<128x128xf32>
      %c0_11 = arith.constant 0 : index
      %c0_12 = arith.constant 0 : index
      %19 = vector.load %arg7[%c0_11, %c0_12] : memref<1x128xf32, #tpu.memory_space<vmem>>, vector<1x128xf32>
      %cst_13 = arith.constant dense<0.000000e+00> : vector<128xf32>
      %20 = vector.multi_reduction <add>, %18, %cst_13 [0] : vector<128x128xf32> to vector<128xf32>
      %21 = vector.shape_cast %20 : vector<128xf32> to vector<1x128xf32>
      %22 = arith.addf %19, %21 : vector<1x128xf32>
      %c0_14 = arith.constant 0 : index
      %c0_15 = arith.constant 0 : index
      %23 = vector.load %arg7[%c0_14, %c0_15] : memref<1x128xf32, #tpu.memory_space<vmem>>, vector<1x128xf32>
      tpu.vector_store %arg7[%c0_14, %c0_15], %22 {strides = array<i32>} : memref<1x128xf32, #tpu.memory_space<vmem>>, vector<1x128xf32>,
      %c0_16 = arith.constant 0 : index
      %c0_17 = arith.constant 0 : index
      %24 = vector.load %arg8[%c0_16, %c0_17] : memref<1x128xf32, #tpu.memory_space<vmem>>, vector<1x128xf32>
      %25 = arith.mulf %18, %18 : vector<128x128xf32>
      %cst_18 = arith.constant dense<0.000000e+00> : vector<128xf32>
      %26 = vector.multi_reduction <add>, %25, %cst_18 [0] : vector<128x128xf32> to vector<128xf32>
      %27 = vector.shape_cast %26 : vector<128xf32> to vector<1x128xf32>
      %28 = arith.addf %24, %27 : vector<1x128xf32>
      %c0_19 = arith.constant 0 : index
      %c0_20 = arith.constant 0 : index
      %29 = vector.load %arg8[%c0_19, %c0_20] : memref<1x128xf32, #tpu.memory_space<vmem>>, vector<1x128xf32>
      tpu.vector_store %arg8[%c0_19, %c0_20], %28 {strides = array<i32>} : memref<1x128xf32, #tpu.memory_space<vmem>>, vector<1x128xf32>,
      %30 = arith.truncf %18 : vector<128x128xf32> to vector<128x128xbf16>
      %31 = arith.index_cast %arg1 : i32 to index
      %c0_21 = arith.constant 0 : index
      %c0_22 = arith.constant 0 : index
      %32 = vector.load %arg11[%31, %c0_21, %c0_22] : memref<1x128x128xbf16, #tpu.memory_space<vmem>>, vector<1x128x128xbf16>
      %33 = vector.shape_cast %32 : vector<1x128x128xbf16> to vector<128x128xbf16>
      %34 = vector.shape_cast %30 : vector<128x128xbf16> to vector<1x128x128xbf16>
      tpu.vector_store %arg11[%31, %c0_21, %c0_22], %34 {strides = array<i32>} : memref<1x128x128xbf16, #tpu.memory_space<vmem>>, vector<1x128x128xbf16>,
    } else {
    }
    %c1_i32 = arith.constant 1 : i32
    %8 = arith.cmpi eq, %arg0, %c1_i32 : i32
    %c0_i32_4 = arith.constant 0 : i32
    %9 = arith.cmpi eq, %arg1, %c0_i32_4 : i32
    %10 = arith.andi %8, %9 : i1
    %11 = arith.extui %10 : i1 to i32
    %c0_i32_5 = arith.constant 0 : i32
    %12 = arith.cmpi ne, %11, %c0_i32_5 : i32
    scf.if %12 {
      %c0 = arith.constant 0 : index
      %c0_8 = arith.constant 0 : index
      %16 = vector.load %arg7[%c0, %c0_8] : memref<1x128xf32, #tpu.memory_space<vmem>>, vector<1x128xf32>
      %cst = arith.constant 7.812500e-03 : f32
      %17 = vector.broadcast %cst : f32 to vector<1x128xf32>
      %18 = arith.mulf %16, %17 : vector<1x128xf32>
      %c0_9 = arith.constant 0 : index
      %c0_10 = arith.constant 0 : index
      %19 = vector.load %arg8[%c0_9, %c0_10] : memref<1x128xf32, #tpu.memory_space<vmem>>, vector<1x128xf32>
      %cst_11 = arith.constant 7.812500e-03 : f32
      %20 = vector.broadcast %cst_11 : f32 to vector<1x128xf32>
      %21 = arith.mulf %19, %20 : vector<1x128xf32>
      %22 = arith.mulf %18, %18 : vector<1x128xf32>
      %23 = arith.subf %21, %22 : vector<1x128xf32>
      %cst_12 = arith.constant 0.000000e+00 : f32
      %24 = vector.broadcast %cst_12 : f32 to vector<1x128xf32>
      %25 = arith.maximumf %23, %24 : vector<1x128xf32>
      %c0_13 = arith.constant 0 : index
      %c0_14 = arith.constant 0 : index
      %26 = vector.load %arg4[%c0_13, %c0_14] : memref<1x128xf32, #tpu.memory_space<vmem>>, vector<1x128xf32>
      %cst_15 = arith.constant 9.99999974E-6 : f32
      %27 = vector.broadcast %cst_15 : f32 to vector<1x128xf32>
      %28 = arith.addf %25, %27 : vector<1x128xf32>
      %29 = math.rsqrt %28 : vector<1x128xf32>
      %30 = arith.mulf %26, %29 : vector<1x128xf32>
      %c0_16 = arith.constant 0 : index
      %c0_17 = arith.constant 0 : index
      %31 = vector.load %arg9[%c0_16, %c0_17] : memref<1x128xf32, #tpu.memory_space<vmem>>, vector<1x128xf32>
      tpu.vector_store %arg9[%c0_16, %c0_17], %30 {strides = array<i32>} : memref<1x128xf32, #tpu.memory_space<vmem>>, vector<1x128xf32>,
      %c0_18 = arith.constant 0 : index
      %c0_19 = arith.constant 0 : index
      %32 = vector.load %arg5[%c0_18, %c0_19] : memref<1x128xf32, #tpu.memory_space<vmem>>, vector<1x128xf32>
      %33 = arith.mulf %18, %30 : vector<1x128xf32>
      %34 = arith.subf %32, %33 : vector<1x128xf32>
      %c0_20 = arith.constant 0 : index
      %c0_21 = arith.constant 0 : index
      %35 = vector.load %arg10[%c0_20, %c0_21] : memref<1x128xf32, #tpu.memory_space<vmem>>, vector<1x128xf32>
      tpu.vector_store %arg10[%c0_20, %c0_21], %34 {strides = array<i32>} : memref<1x128xf32, #tpu.memory_space<vmem>>, vector<1x128xf32>,
    } else {
    }
    %c1_i32_6 = arith.constant 1 : i32
    %13 = arith.cmpi eq, %arg0, %c1_i32_6 : i32
    %14 = arith.extui %13 : i1 to i32
    %c0_i32_7 = arith.constant 0 : i32
    %15 = arith.cmpi ne, %14, %c0_i32_7 : i32
    scf.if %15 {
      %16 = arith.index_cast %arg1 : i32 to index
      %c0 = arith.constant 0 : index
      %c0_8 = arith.constant 0 : index
      %17 = vector.load %arg11[%16, %c0, %c0_8] : memref<1x128x128xbf16, #tpu.memory_space<vmem>>, vector<1x128x128xbf16>
      %18 = vector.shape_cast %17 : vector<1x128x128xbf16> to vector<128x128xbf16>
      %19 = arith.extf %18 : vector<128x128xbf16> to vector<128x128xf32>
      %c0_9 = arith.constant 0 : index
      %c0_10 = arith.constant 0 : index
      %20 = vector.load %arg9[%c0_9, %c0_10] : memref<1x128xf32, #tpu.memory_space<vmem>>, vector<1x128xf32>
      %21 = vector.broadcast %20 : vector<1x128xf32> to vector<128x128xf32>
      %22 = arith.mulf %19, %21 : vector<128x128xf32>
      %c0_11 = arith.constant 0 : index
      %c0_12 = arith.constant 0 : index
      %23 = vector.load %arg10[%c0_11, %c0_12] : memref<1x128xf32, #tpu.memory_space<vmem>>, vector<1x128xf32>
      %24 = vector.broadcast %23 : vector<1x128xf32> to vector<128x128xf32>
      %25 = arith.addf %22, %24 : vector<128x128xf32>
      %cst = arith.constant 0.000000e+00 : f32
      %26 = vector.broadcast %cst : f32 to vector<128x128xf32>
      %27 = arith.maximumf %25, %26 : vector<128x128xf32>
      %28 = arith.truncf %27 : vector<128x128xf32> to vector<128x128xbf16>
      %c0_13 = arith.constant 0 : index
      %c0_14 = arith.constant 0 : index
      %29 = vector.load %arg6[%c0_13, %c0_14] : memref<128x128xbf16, #tpu.memory_space<vmem>>, vector<128x128xbf16>
      tpu.vector_store %arg6[%c0_13, %c0_14], %28 {strides = array<i32>} : memref<128x128xbf16, #tpu.memory_space<vmem>>, vector<128x128xbf16>,
    } else {
    }
    return
  }
  func.func @transform_0(%arg0: i32, %arg1: i32) -> (i32, i32) {
    %c1_i32 = arith.constant 1 : i32
    %0 = arith.subi %c1_i32, %arg0 : i32
    %1 = arith.muli %0, %arg1 : i32
    %c0_i32 = arith.constant 0 : i32
    %c0_i32_0 = arith.constant 0 : i32
    return %1, %c0_i32 : i32, i32
  }
  func.func @transform_1(%arg0: i32, %arg1: i32) -> (i32, i32) {
    %c0_i32 = arith.constant 0 : i32
    %c0_i32_0 = arith.constant 0 : i32
    %c0_i32_1 = arith.constant 0 : i32
    return %c0_i32, %c0_i32_0 : i32, i32
  }
  func.func @transform_2(%arg0: i32, %arg1: i32) -> (i32, i32) {
    %c0_i32 = arith.constant 0 : i32
    %c0_i32_0 = arith.constant 0 : i32
    %c0_i32_1 = arith.constant 0 : i32
    return %c0_i32, %c0_i32_0 : i32, i32
  }
  func.func @transform_3(%arg0: i32, %arg1: i32) -> (i32, i32) {
    %c0_i32 = arith.constant 0 : i32
    %c0_i32_0 = arith.constant 0 : i32
    %c0_i32_1 = arith.constant 0 : i32
    return %c0_i32, %c0_i32_0 : i32, i32
  }
  func.func @transform_4(%arg0: i32, %arg1: i32) -> (i32, i32) {
    %0 = arith.muli %arg0, %arg1 : i32
    %c0_i32 = arith.constant 0 : i32
    %c0_i32_0 = arith.constant 0 : i32
    return %0, %c0_i32 : i32, i32
  }
}

</mosaic_0001>

<bundles_post_ra>
// kernel: tpu_custom_call.1
= control target key start
LH: loop header
LB: loop body
LE: loop exit
PB: predicated region body
PF: predicated region fallthrough
CT: control target
= control target key end

     0   :  { %9 = vsyncpa [#allocation8], 0  ;;  %s1221_s0 = inlined_call_operand.vmem [shape: bf16[128,48], index: 0, kind: input, shape index: {}]   ;;  %s1222_s1 = inlined_call_operand.vmem [shape: bf16[48,128], index: 1, kind: input, shape index: {}]   ;;  %s1223_s2 = inlined_call_operand.vmem [shape: f32[1,128], index: 2, kind: input, shape index: {}]   ;;  %s1224_s3 = inlined_call_operand.vmem [shape: f32[1,128], index: 3, kind: input, shape index: {}]   ;;  %s1225_s4 = inlined_call_operand.hbm [shape: bf16[128,128], index: 4, kind: output, shape index: {}]  }
   0x1   :  { %11 = vsyncpa [#allocation8 + $0x1], 0  ;;  %s1089_s15 = smov 0   ;;  %s1091_s16 = smov 0  }
   0x2   :  { %s1093_s17 = smov 0  }
   0x3 LB: > { %s740_s18 = sadd.s32 4294967295, %s1058_s17   ;;  %s741_s19 = sadd.s32 4294967294, %s1058_s17   ;;  %s1058_s17 = sphi %s1093_s17, %s17_s17   ;;  %s1054_s16 = sphi %s1091_s16, %s1227_s16   ;;  %s1050_s15 = sphi %s1089_s15, %s1226_s15  }
   0x4   : > { %s29_s20 = sadd.s32 1, %s1054_s16  ;;  %p745_p0 = scmp.ge.s32.totalorder %s1058_s17, 1 }
   0x5   : > { %p31_p1 = scmp.ge.s32.totalorder %s29_s20, 2  ;;  %p188_p2 = scmp.lt.s32.totalorder %s1058_s17, 3 }
   0x7   : > { %s1229_s20 = smov (%p31_p1, %s29_s20), 0  ;;  %p189_p3 = pnand %p745_p0, %p188_p2 }
   0x8   : > { %p229_p4 = scmp.eq.s32.totalorder (!%p189_p3), %s1050_s15, 0 }
   0x9   : > { %192 = sbr.rel (%p189_p3) target bundleno = 306 (0x132), region = 36 }
   0xe   : > { %234 = sbr.rel (!%p229_p4) target bundleno = 19 (0x13), region = 40  ;;  %v1060_v0 = vmov (%p229_p4), 0.0  }
   0xf   : > { %235 = vst [vmem:[#allocation2] sm:$0x1] (%p229_p4), %v1060_v0 }
  0x10   : > { %236 = vst [vmem:[#allocation3] sm:$0x1] (%p229_p4), %v1060_v0 }
  0x13 PF: > { %p747_p5 = scmp.ne.s32.totalorder %s1050_s15, 0 }
  0x15   : > { %239 = sbr.rel (%p747_p5) target bundleno = 231 (0xe7), region = 44 }
  0x1a   : > { %v817_v1 = vld [vmem:[%s1222_s1 + $0x10] sm:$0xff]  ;;  %v816_v2 = vld [vmem:[%s1222_s1 + $0x8] sm:$0xff]  ;;  %v815_v3 = vld [vmem:[%s1222_s1] sm:$0xff]  ;;  %vm320_vm0 = vcmask 392192  }
  0x1b   : > { %350 = vmatpush.bf16.msra.mxu0 %v817_v1  ;;  %952 = vmatpush.bf16.msra.mxu1 %v817_v1  ;;  %v807_v4 = vld [vmem:[%s1221_s0] sm:$0xff]  ;;  %v809_v5 = vld [vmem:[%s1221_s0 + $0x10] sm:$0xff]  ;;  %v808_v8 = vld [vmem:[%s1221_s0 + $0x8] sm:$0xff] }
  0x1c   : > { %953 = vmatpush.bf16.msra.mxu2 %v817_v1  ;;  %954 = vmatpush.bf16.msra.mxu3 %v817_v1  ;;  %v811_v6 = vld [vmem:[%s1221_s0 + $0x20] sm:$0xff]  ;;  %v813_v7 = vld [vmem:[%s1221_s0 + $0x30] sm:$0xff]  ;;  %v810_v9 = vld [vmem:[%s1221_s0 + $0x18] sm:$0xff] }
  0x1d   : > { %v812_v10 = vld [vmem:[%s1221_s0 + $0x28] sm:$0xff]  ;;  %v814_v11 = vld [vmem:[%s1221_s0 + $0x38] sm:$0xff] }
  0x1f   : > { %351 = vmatpush.bf16.msra.mxu0 %v816_v2  ;;  %955 = vmatpush.bf16.msra.mxu1 %v816_v2 }
  0x20   : > { %956 = vmatpush.bf16.msra.mxu2 %v816_v2  ;;  %957 = vmatpush.bf16.msra.mxu3 %v816_v2 }
  0x23   : > { %352 = vmatpush.bf16.msra.mxu0 %v815_v3  ;;  %958 = vmatpush.bf16.msra.mxu1 %v815_v3 }
  0x24   : > { %959 = vmatpush.bf16.msra.mxu2 %v815_v3  ;;  %960 = vmatpush.bf16.msra.mxu3 %v815_v3 }
  0x26   : > { %792 = vmatmul.msk.bf16.vlgmr.msra.gmra.mxu0 %vm320_vm0, %v807_v4  ;;  %794 = vmatmul.msk.bf16.vlgmr.msra.gmra.mxu1 %vm320_vm0, %v809_v5 }
  0x27   : > { %796 = vmatmul.msk.bf16.vlgmr.msra.gmra.mxu2 %vm320_vm0, %v811_v6  ;;  %798 = vmatmul.msk.bf16.vlgmr.msra.gmra.mxu3 %vm320_vm0, %v813_v7 }
  0x36   : > { %793 = vmatmul.msk.bf16.gmra.mxu0 %vm320_vm0, %v808_v8  ;;  %795 = vmatmul.msk.bf16.gmra.mxu1 %vm320_vm0, %v810_v9 }
  0x37   : > { %797 = vmatmul.msk.bf16.gmra.mxu2 %vm320_vm0, %v812_v10  ;;  %799 = vmatmul.msk.bf16.gmra.mxu3 %vm320_vm0, %v814_v11 }
  0xa3   : > { %v354_v12 = vpop.f32.mrf.mxu0  ;;  %v364_v13 = vpop.f32.mrf.mxu1 }
  0xa4   : > { %v419_v27 = vmul.f32 %v354_v12, %v354_v12  ;;  %v423_v41 = vmul.f32 %v364_v13, %v364_v13 }
  0xaa   : > { %v374_v14 = vpop.f32.mrf.mxu2  ;;  %v1154_v15 = vpop.f32.mrf.mxu3 }
  0xab   : > { %v356_v16 = vpop.f32.mrf.mxu0  ;;  %v366_v17 = vpop.f32.mrf.mxu1  ;;  %v427_v57 = vmul.f32 %v374_v14, %v374_v14  ;;  %v431_v5 = vmul.f32 %v1154_v15, %v1154_v15 }
  0xac   : > { %v822_v18 = vpack.c.bf16 %v356_v16, %v354_v12  ;;  %v832_v19 = vpack.c.bf16 %v366_v17, %v364_v13  ;;  %v420_v26 = vmul.f32 %v356_v16, %v356_v16  ;;  %v395_v28 = vadd.f32 %v356_v16, %v354_v12 }
  0xad   : > { %v424_v44 = vmul.f32 %v366_v17, %v366_v17 }
  0xae   : > { %823 = vst [vmem:[#allocation6 + $0x30] sm:$0xff] %v822_v18   ;;  %v435_v30 = vadd.f32 %v420_v26, %v419_v27 }
  0xaf   : > { %932 = vst [vmem:[#allocation6 + $0x18] sm:$0xff] %v832_v19  }
  0xb2   : > { %v376_v20 = vpop.f32.mrf.mxu2  ;;  %v386_v21 = vpop.f32.mrf.mxu3 }
  0xb3   : > { %v359_v22 = vpop.f32.mrf.mxu0  ;;  %v369_v23 = vpop.f32.mrf.mxu1  ;;  %v842_v24 = vpack.c.bf16 %v376_v20, %v374_v14  ;;  %v852_v25 = vpack.c.bf16 %v386_v21, %v1154_v15  ;;  %v428_v60 = vmul.f32 %v376_v20, %v376_v20  ;;  %v432_v8 = vmul.f32 %v386_v21, %v386_v21 }
  0xb4   : > { %v421_v29 = vmul.f32 %v359_v22, %v359_v22  ;;  %v396_v31 = vadd.f32 %v395_v28, %v359_v22  ;;  %v425_v47 = vmul.f32 %v369_v23, %v369_v23  ;;  %v394_v28 = vld [vmem:[#allocation2] sm:$0x1] }
  0xb5   : > { %934 = vst [vmem:[#allocation6 + $0x8] sm:$0xff] %v842_v24  }
  0xb6   : > { %936 = vst [vmem:[#allocation6 + $0x28] sm:$0xff] %v852_v25   ;;  %v436_v36 = vadd.f32 %v435_v30, %v421_v29 }
  0xba   : > { %v379_v32 = vpop.f32.mrf.mxu2  ;;  %v389_v33 = vpop.f32.mrf.mxu3 }
  0xbb   : > { %v361_v34 = vpop.f32.mrf.mxu0  ;;  %v371_v35 = vpop.f32.mrf.mxu1  ;;  %v429_v0 = vmul.f32 %v379_v32, %v379_v32  ;;  %v433_v12 = vmul.f32 %v389_v33, %v389_v33 }
  0xbc   : > { %v397_v37 = vadd.f32 %v396_v31, %v361_v34  ;;  %v422_v38 = vmul.f32 %v361_v34, %v361_v34  ;;  %v827_v39 = vpack.c.bf16 %v361_v34, %v359_v22  ;;  %v837_v40 = vpack.c.bf16 %v371_v35, %v369_v23 }
  0xbd   : > { %v426_v55 = vmul.f32 %v371_v35, %v371_v35 }
  0xbe   : > { %v398_v42 = vadd.f32 %v397_v37, %v364_v13  ;;  %v437_v43 = vadd.f32 %v436_v36, %v422_v38  ;;  %931 = vst [vmem:[#allocation6] sm:$0xff] %v827_v39  }
  0xbf   : > { %933 = vst [vmem:[#allocation6 + $0x10] sm:$0xff] %v837_v40  }
  0xc0   : > { %v438_v45 = vadd.f32 %v437_v43, %v423_v41  ;;  %v399_v46 = vadd.f32 %v398_v42, %v366_v17 }
  0xc2   : > { %v400_v48 = vadd.f32 %v399_v46, %v369_v23  ;;  %v439_v49 = vadd.f32 %v438_v45, %v424_v44  ;;  %v381_v50 = vpop.f32.mrf.mxu2  ;;  %v391_v51 = vpop.f32.mrf.mxu3 }
  0xc3   : > { %v847_v52 = vpack.c.bf16 %v381_v50, %v379_v32  ;;  %v857_v53 = vpack.c.bf16 %v391_v51, %v389_v33  ;;  %v430_v4 = vmul.f32 %v381_v50, %v381_v50  ;;  %v434_v17 = vmul.f32 %v391_v51, %v391_v51 }
  0xc4   : > { %v401_v54 = vadd.f32 %v400_v48, %v371_v35  ;;  %v440_v56 = vadd.f32 %v439_v49, %v425_v47 }
  0xc5   : > { %935 = vst [vmem:[#allocation6 + $0x20] sm:$0xff] %v847_v52  }
  0xc6   : > { %v402_v58 = vadd.f32 %v401_v54, %v374_v14  ;;  %v441_v59 = vadd.f32 %v440_v56, %v426_v55  ;;  %937 = vst [vmem:[#allocation6 + $0x38] sm:$0xff] %v857_v53  }
  0xc8   : > { %v442_v61 = vadd.f32 %v441_v59, %v427_v57  ;;  %v403_v62 = vadd.f32 %v402_v58, %v376_v20 }
  0xca   : > { %v404_v63 = vadd.f32 %v403_v62, %v379_v32  ;;  %v443_v1 = vadd.f32 %v442_v61, %v428_v60 }
  0xcc   : > { %v444_v2 = vadd.f32 %v443_v1, %v429_v0  ;;  %v405_v3 = vadd.f32 %v404_v63, %v381_v50 }
  0xce   : > { %v406_v6 = vadd.f32 %v405_v3, %v1154_v15  ;;  %v445_v7 = vadd.f32 %v444_v2, %v430_v4 }
  0xd0   : > { %v446_v9 = vadd.f32 %v445_v7, %v431_v5  ;;  %v407_v10 = vadd.f32 %v406_v6, %v386_v21  ;;  %v418_v21 = vld [vmem:[#allocation3] sm:$0x1] }
  0xd2   : > { %v408_v11 = vadd.f32 %v407_v10, %v389_v33  ;;  %v447_v13 = vadd.f32 %v446_v9, %v432_v8 }
  0xd4   : > { %v448_v14 = vadd.f32 %v447_v13, %v433_v12  ;;  %v409_v16 = vadd.f32 %v408_v11, %v391_v51 }
  0xd6   : > { %v410_v18 = vrot.slane %v409_v16, 4  ;;  %v449_v19 = vadd.f32 %v448_v14, %v434_v17 }
  0xd8   : > { %v411_v20 = vadd.f32 %v410_v18, %v409_v16  ;;  %v450_v22 = vrot.slane %v449_v19, 4 }
  0xda   : > { %v412_v23 = vrot.slane %v411_v20, 2  ;;  %v451_v24 = vadd.f32 %v450_v22, %v449_v19 }
  0xdc   : > { %v413_v25 = vadd.f32 %v412_v23, %v411_v20  ;;  %v452_v26 = vrot.slane %v451_v24, 2 }
  0xde   : > { %v414_v27 = vrot.slane %v413_v25, 1  ;;  %v453_v15 = vadd.f32 %v452_v26, %v451_v24 }
  0xe0   : > { %v415_v29 = vadd.f32 %v414_v27, %v413_v25  ;;  %v454_v30 = vrot.slane %v453_v15, 1 }
  0xe2   : > { %v416_v31 = vadd.f32 %v415_v29, %v394_v28  ;;  %v455_v32 = vadd.f32 %v454_v30, %v453_v15 }
  0xe4   : > { %417 = vst [vmem:[#allocation2] sm:$0x1] %v416_v31  ;;  %v456_v33 = vadd.f32 %v455_v32, %v418_v21 }
  0xe6   : > { %457 = vst [vmem:[#allocation3] sm:$0x1] %v456_v33 }
  0xe7 PF: > { %p493_p6 = scmp.eq.s32.totalorder %s1050_s15, 1 }
  0xe8   : > { %v505_v47 = vld [vmem:[%s1223_s2] sm:$0x1] (%p493_p6) }
  0xe9   : > { %497 = sbr.rel (!%p493_p6) target bundleno = 271 (0x10f), region = 48  ;;  %v519_v51 = vld [vmem:[%s1224_s3] sm:$0x1] (%p493_p6) }
  0xeb   : > { %v498_v34 = vld [vmem:[#allocation2] sm:$0x1] (%p493_p6) }
  0xec   : > { %v499_v36 = vmul.f32 (%p493_p6), 0.0078125, %v498_v34 }
  0xed   : > { %v500_v35 = vld [vmem:[#allocation3] sm:$0x1] (%p493_p6) }
  0xee   : > { %v501_v37 = vmul.f32 0.0078125, %v500_v35  ;;  %v502_v38 = vmul.f32 %v499_v36, %v499_v36 }
  0xf0   : > { %v503_v39 = vsub.f32 %v501_v37, %v502_v38 }
  0xf2   : > { %v504_v40 = vmax.f32 %v503_v39, 0.0 }
  0xf4   : > { %v506_v41 = vadd.f32 1e-05, %v504_v40 }
  0xf6   : > { %1000 = vrsqrt.f32 %v506_v41  ;;  %vm513_vm1 = vweird.f32 %v506_v41 }
  0xfc   : > { %v1001_v42 = vpop.eup %1000 }
  0xfd   : > { %v508_v43 = vmul.f32 %v1001_v42, %v506_v41  ;;  %vm514_vm2 = vweird.f32 %v1001_v42 }
  0xfe   : > { %vm515_vm3 = vmor %vm513_vm1, %vm514_vm2 }
  0xff   : > { %v509_v44 = vmul.f32 %v1001_v42, %v508_v43 }
 0x101   : > { %v510_v45 = vmul.f32 0.5, %v509_v44 }
 0x103   : > { %v511_v46 = vsub.f32 1.5, %v510_v45 }
 0x105   : > { %v512_v48 = vmul.f32 %v1001_v42, %v511_v46 }
 0x107   : > { %v516_v49 = vsel %vm515_vm3, %v1001_v42, %v512_v48 }
 0x108   : > { %v517_v50 = vmul.f32 %v516_v49, %v505_v47 }
 0x10a   : > { %518 = vst [vmem:[#allocation4] sm:$0x1] %v517_v50  ;;  %v520_v52 = vmul.f32 %v517_v50, %v499_v36 }
 0x10c   : > { %v521_v53 = vsub.f32 %v519_v51, %v520_v52 }
 0x10e   : > { %522 = vst [vmem:[#allocation5] sm:$0x1] %v521_v53 }
 0x10f PF: > { %p801_p7 = scmp.ne.s32.totalorder %s1050_s15, 1 }
 0x111   : > { %525 = sbr.rel (%p801_p7) target bundleno = 302 (0x12e), region = 52 }
 0x116   : > { %v860_v54 = vld [vmem:[#allocation6 + $0x30] sm:$0xff]   ;;  %v1168_v55 = vld [vmem:[#allocation4] ss:$0 sm:$0xff]  ;;  %v1170_v58 = vld [vmem:[#allocation5] ss:$0 sm:$0xff] }
 0x117   : > { %v861_v56 = vunpack.c.l.bf16 %v860_v54  ;;  %v862_v57 = vunpack.c.h.bf16 %v860_v54  ;;  %v938_v59 = vld [vmem:[#allocation6] sm:$0xff]   ;;  %v939_v62 = vld [vmem:[#allocation6 + $0x18] sm:$0xff]   ;;  %v940_v63 = vld [vmem:[#allocation6 + $0x10] sm:$0xff]  }
 0x118   : > { %v865_v60 = vunpack.c.l.bf16 %v938_v59  ;;  %v866_v61 = vunpack.c.h.bf16 %v938_v59  ;;  %v869_v2 = vunpack.c.l.bf16 %v939_v62  ;;  %v870_v3 = vunpack.c.h.bf16 %v939_v62  ;;  %v941_v17 = vld [vmem:[#allocation6 + $0x8] sm:$0xff]   ;;  %v942_v27 = vld [vmem:[#allocation6 + $0x20] sm:$0xff]   ;;  %v944_v35 = vld [vmem:[#allocation6 + $0x38] sm:$0xff]  }
 0x119   : > { %v565_v0 = vmul.f32 %v1168_v55, %v861_v56  ;;  %v566_v1 = vmul.f32 %v1168_v55, %v862_v57  ;;  %v873_v6 = vunpack.c.l.bf16 %v940_v63  ;;  %v874_v7 = vunpack.c.h.bf16 %v940_v63  ;;  %v943_v21 = vld [vmem:[#allocation6 + $0x28] sm:$0xff]  }
 0x11a   : > { %v567_v4 = vmul.f32 %v1168_v55, %v865_v60  ;;  %v568_v5 = vmul.f32 %v1168_v55, %v866_v61  ;;  %v569_v10 = vmul.f32 %v1168_v55, %v869_v2  ;;  %v570_v11 = vmul.f32 %v1168_v55, %v870_v3 }
 0x11b   : > { %v585_v8 = vadd.f32 %v1170_v58, %v565_v0  ;;  %v586_v9 = vadd.f32 %v1170_v58, %v566_v1  ;;  %v571_v14 = vmul.f32 %v1168_v55, %v873_v6  ;;  %v572_v16 = vmul.f32 %v1168_v55, %v874_v7 }
 0x11c   : > { %v587_v12 = vadd.f32 %v1170_v58, %v567_v4  ;;  %v588_v13 = vadd.f32 %v1170_v58, %v568_v5  ;;  %v589_v20 = vadd.f32 %v1170_v58, %v569_v10  ;;  %v590_v22 = vadd.f32 %v1170_v58, %v570_v11 }
 0x11d   : > { %v601_v18 = vmax.f32 %v585_v8, 0.0  ;;  %v602_v19 = vmax.f32 %v586_v9, 0.0  ;;  %v591_v25 = vadd.f32 %v1170_v58, %v571_v14  ;;  %v592_v26 = vadd.f32 %v1170_v58, %v572_v16 }
 0x11e   : > { %v603_v23 = vmax.f32 %v587_v12, 0.0  ;;  %v604_v24 = vmax.f32 %v588_v13, 0.0  ;;  %v605_v28 = vmax.f32 %v589_v20, 0.0  ;;  %v606_v29 = vmax.f32 %v590_v22, 0.0 }
 0x11f   : > { %v894_v15 = vpack.c.bf16 %v602_v19, %v601_v18  ;;  %v877_v30 = vunpack.c.l.bf16 %v941_v17  ;;  %v607_v32 = vmax.f32 %v591_v25, 0.0  ;;  %v608_v33 = vmax.f32 %v592_v26, 0.0 }
 0x120   : > { %v899_v31 = vpack.c.bf16 %v604_v24, %v603_v23  ;;  %v878_v34 = vunpack.c.h.bf16 %v941_v17  ;;  %v904_v36 = vpack.c.bf16 %v606_v29, %v605_v28  ;;  %v881_v38 = vunpack.c.l.bf16 %v942_v27 }
 0x121   : > { %895 = vst [vmem:[#allocation7] sm:$0xff] %v894_v15   ;;  %v573_v37 = vmul.f32 %v1168_v55, %v877_v30  ;;  %v882_v39 = vunpack.c.h.bf16 %v942_v27  ;;  %v909_v40 = vpack.c.bf16 %v608_v33, %v607_v32  ;;  %v885_v42 = vunpack.c.l.bf16 %v943_v21 }
 0x122   : > { %945 = vst [vmem:[#allocation7 + $0x8] sm:$0xff] %v899_v31   ;;  %v574_v41 = vmul.f32 %v1168_v55, %v878_v34  ;;  %v886_v43 = vunpack.c.h.bf16 %v943_v21  ;;  %v575_v45 = vmul.f32 %v1168_v55, %v881_v38  ;;  %v889_v47 = vunpack.c.l.bf16 %v944_v35 }
 0x123   : > { %946 = vst [vmem:[#allocation7 + $0x10] sm:$0xff] %v904_v36   ;;  %v593_v44 = vadd.f32 %v1170_v58, %v573_v37  ;;  %v576_v46 = vmul.f32 %v1168_v55, %v882_v39  ;;  %v577_v49 = vmul.f32 %v1168_v55, %v885_v42  ;;  %v890_v51 = vunpack.c.h.bf16 %v944_v35 }
 0x124   : > { %947 = vst [vmem:[#allocation7 + $0x18] sm:$0xff] %v909_v40   ;;  %v594_v48 = vadd.f32 %v1170_v58, %v574_v41  ;;  %v578_v50 = vmul.f32 %v1168_v55, %v886_v43  ;;  %v595_v53 = vadd.f32 %v1170_v58, %v575_v45  ;;  %v579_v56 = vmul.f32 %v1168_v55, %v889_v47 }
 0x125   : > { %v609_v52 = vmax.f32 %v593_v44, 0.0  ;;  %v596_v54 = vadd.f32 %v1170_v58, %v576_v46  ;;  %v597_v59 = vadd.f32 %v1170_v58, %v577_v49  ;;  %v580_v61 = vmul.f32 %v1168_v55, %v890_v51 }
 0x126   : > { %v610_v57 = vmax.f32 %v594_v48, 0.0  ;;  %v598_v60 = vadd.f32 %v1170_v58, %v578_v50  ;;  %v611_v62 = vmax.f32 %v595_v53, 0.0  ;;  %v599_v0 = vadd.f32 %v1170_v58, %v579_v56 }
 0x127   : > { %v612_v63 = vmax.f32 %v596_v54, 0.0  ;;  %v613_v2 = vmax.f32 %v597_v59, 0.0  ;;  %v600_v4 = vadd.f32 %v1170_v58, %v580_v61 }
 0x128   : > { %v914_v1 = vpack.c.bf16 %v610_v57, %v609_v52  ;;  %v614_v3 = vmax.f32 %v598_v60, 0.0  ;;  %v615_v6 = vmax.f32 %v599_v0, 0.0 }
 0x129   : > { %v919_v5 = vpack.c.bf16 %v612_v63, %v611_v62  ;;  %v616_v8 = vmax.f32 %v600_v4, 0.0 }
 0x12a   : > { %948 = vst [vmem:[#allocation7 + $0x20] sm:$0xff] %v914_v1   ;;  %v924_v7 = vpack.c.bf16 %v614_v3, %v613_v2 }
 0x12b   : > { %949 = vst [vmem:[#allocation7 + $0x28] sm:$0xff] %v919_v5   ;;  %v929_v9 = vpack.c.bf16 %v616_v8, %v615_v6 }
 0x12c   : > { %950 = vst [vmem:[#allocation7 + $0x30] sm:$0xff] %v924_v7  }
 0x12d   : > { %951 = vst [vmem:[#allocation7 + $0x38] sm:$0xff] %v929_v9  }
 0x12e PF: > { %p969_p8 = scmp.eq.s32.totalorder %s740_s18, 1  ;;  %s665_s28 = sshll.u32 %s1225_s4, 4  ;;  %s666_s28 = int_to_ptr.hbm [resolvable:$true] %s665_s28 }
 0x12f   : > { %s1061_s29 = smov [#allocation7]   ;;  %s1062_s5 = smov 64  }
 0x130   : > { %s663_s30 = sshll.u32 %s1061_s29, 4  ;;  %s1063_s6 = smov 4   ;;  %s664_s30 = int_to_ptr.vmem [resolvable:$true] %s663_s30 }
 0x131   : > { %962 = dma.vmem_to_hbm [thread:$0]  (%p969_p8), %s664_s30, 1024, %s666_s28, [#allocation8], %s1062_s5, %s1062_s5, %s1063_s6  }
 0x132 PF: > { %p970_p9 = scmp.ge.s32.totalorder %s1058_s17, 2  ;;  %p971_p10 = scmp.eq.s32.totalorder %s741_s19, 1 }
 0x134   : > { %p966_p11 = pnand %p971_p10, %p970_p9 }
 0x136   : > { %p967_p12 = pneg %p966_p11 }
 0x138   : > { %1045 = dma.done.wait (%p967_p12), [#allocation8], 1024  }
 0x139   : > { %1047 = vsyncadd (%p967_p12), [#allocation8], 4294966272  ;;  %s17_s17 = sadd.s32 1, %s1058_s17   ;;  %s1226_s15 = smov %s1054_s16 }
 0x13a   : > { %p14_p13 = scmp.ge.s32.totalorder %s17_s17, 4   ;;  %s1227_s16 = smov %s1229_s20 }
 0x13c   :  { %16 = sbr.rel (!%p14_p13) target bundleno = 3 (0x3), region = 89 }
 0x141   :  { %687 = vsyncpa [#allocation8], 1 }
 0x142   :  { %689 = vsyncpa [#allocation8 + $0x1], 1 }

</bundles_post_ra>
